<compile_context>
chip_gen: v5e
topology: v5e:2x2
jax: 0.10.0
libtpu: 0.0.40
codegen_flags: <defaults>
</compile_context>

<pallas_src>
import jax
import jax.numpy as jnp
from jax.experimental import pallas as pl
from jax.experimental.pallas import tpu as pltpu

_LANE = 128


def mine_kernel(xt_ref, w1_ref, b1_ref, w2_ref, b2_ref, o_ref):
    # xt: (D, TB)  batch on the lane axis
    # w1: (H, D)   fc1.weight (PyTorch layout)
    # b1: (H, 1)   fc1.bias
    # w2: (H, 1)   fc2.weight.T
    # b2: (1, 1)   fc2.bias
    xt = xt_ref[...]
    w1 = w1_ref[...]
    b1 = b1_ref[...]
    w2 = w2_ref[...]
    b2 = b2_ref[...]

    d_in = w1.shape[1]
    # fc1: D broadcast-FMAs on the VPU (K is tiny; avoid the MXU round-trip).
    h = b1 + w1[:, 0:1] * xt[0:1, :]          # (H, 1)*(1, TB) -> (H, TB)
    for d in range(1, d_in):                  # static unroll (D is small)
        h = h + w1[:, d:d + 1] * xt[d:d + 1, :]

    # ELU (alpha=1.0). Clamp the exp argument so the branch that gets masked
    # out cannot overflow; exp(h)-1 on the clamped value matches F.elu to f32
    # precision.  # TODO(synk): use expm1 if/when needed for near-zero accuracy.
    h = jnp.where(h > 0, h, jnp.exp(jnp.minimum(h, 0.0)) - 1.0)

    # fc2 (out_features=1): VPU multiply + sublane reduce instead of an
    # N=1 MXU matmul.
    out = jnp.sum(h * w2, axis=0, keepdims=True) + b2   # (1, TB), lane-dense
    o_ref[...] = out.astype(o_ref.dtype)


def mine_net_forward(x, w1, b1, w2, b2, *, tile_b=1024):
    """x: (B, D); w1: (H, D); b1: (H,); w2: (H, 1); b2: (1,)  ->  (B, 1)."""
    B, D = x.shape
    H, Dw = w1.shape
    assert Dw == D and w2.shape == (H, 1)

    # Batch tile: multiple of 128 lanes, capped by tile_b (sized well under
    # the v7x 32 MiB scoped-VMEM budget even with double buffering).
    b_pad = pl.cdiv(B, _LANE) * _LANE
    tb = max(_LANE, (min(tile_b, b_pad) // _LANE) * _LANE)
    b_pad = pl.cdiv(b_pad, tb) * tb
    num_tiles = b_pad // tb

    # Lane-dense inputs: batch last, zero-padded to the tile multiple.
    x_t = jnp.pad(x.T, ((0, 0), (0, b_pad - B)))   # (D, b_pad)
    b1_col = b1.reshape(H, 1)
    b2_col = b2.reshape(1, 1)

    out_shape = jax.ShapeDtypeStruct((1, b_pad), jnp.float32)

    if num_tiles == 1:
        # Single full-array block; no degenerate grid loop.
        out_t = pl.pallas_call(
            mine_kernel,
            out_shape=out_shape,
        )(x_t, w1, b1_col, w2, b2_col)
    else:
        # Tile the batch (lane axis); weights/biases stay VMEM-resident.
        out_t = pl.pallas_call(
            mine_kernel,
            out_shape=out_shape,
            grid=(num_tiles,),
            in_specs=[
                pl.BlockSpec((D, tb), lambda i: (0, i)),
                pl.BlockSpec((H, D), lambda i: (0, 0)),
                pl.BlockSpec((H, 1), lambda i: (0, 0)),
                pl.BlockSpec((H, 1), lambda i: (0, 0)),
                pl.BlockSpec((1, 1), lambda i: (0, 0)),
            ],
            out_specs=pl.BlockSpec((1, tb), lambda i: (0, i)),
            compiler_params=pltpu.CompilerParams(
                dimension_semantics=("parallel",)
            ),
        )(x_t, w1, b1_col, w2, b2_col)

    return out_t[:, :B].T   # (B, 1)


def init_params(key, input_size, hidden_size=50):
    """Matches mine_net.__init__: weights ~ N(0, 0.02), biases = 0."""
    k1, k2 = jax.random.split(key)
    # fc1.weight in PyTorch layout (hidden, input).
    w1 = (0.02 * jax.random.normal(k1, (hidden_size, input_size))).astype(jnp.float32)
    b1 = jnp.zeros((hidden_size,), jnp.float32)
    # fc2.weight is (1, hidden) in PyTorch; store its transpose (hidden, 1).
    w2 = (0.02 * jax.random.normal(k2, (hidden_size, 1))).astype(jnp.float32)
    b2 = jnp.zeros((1,), jnp.float32)
    return w1, b1, w2, b2


def reference_forward(x, w1, b1, w2, b2):
    h = x @ w1.T + b1
    h = jnp.where(h > 0, h, jnp.exp(jnp.minimum(h, 0.0)) - 1.0)
    return h @ w2 + b2


if __name__ == "__main__":
    key = jax.random.PRNGKey(0)
    k_x, k_p = jax.random.split(key)

    batch = 200          # non-multiple of 128 to exercise padding
    input_size = 4       # joint-sample dim for MINE
    hidden_size = 50     # module default

    x = jax.random.normal(k_x, (batch, input_size), dtype=jnp.float32)
    w1, b1, w2, b2 = init_params(k_p, input_size, hidden_size)
    ref = reference_forward(x, w1, b1, w2, b2)

    # Path 1: single full block (no grid).
    out = jax.block_until_ready(mine_net_forward(x, w1, b1, w2, b2))
    assert out.shape == (batch, 1)
    assert jnp.allclose(out, ref, atol=1e-5, rtol=1e-5)

    # Path 2: tiled batch (grid + "parallel" lane-axis tiles).
    out_tiled = jax.block_until_ready(
        mine_net_forward(x, w1, b1, w2, b2, tile_b=128)
    )
    assert out_tiled.shape == (batch, 1)
    assert jnp.allclose(out_tiled, ref, atol=1e-5, rtol=1e-5)

    print("KERNEL_OK")
</pallas_src>

<mosaic_0001>
module attributes {stable_mosaic.version = 11 : i64} {
  func.func @mine_kernel(%arg0: memref<4x256xf32, #tpu.memory_space<vmem>>, %arg1: memref<50x4xf32, #tpu.memory_space<vmem>>, %arg2: memref<50x1xf32, #tpu.memory_space<vmem>>, %arg3: memref<50x1xf32, #tpu.memory_space<vmem>>, %arg4: memref<1x1xf32, #tpu.memory_space<vmem>>, %arg5: memref<1x256xf32, #tpu.memory_space<vmem>>) attributes {dimension_semantics = [], scalar_prefetch = 0 : i64, scratch_operands = 0 : i64, tpu.core_type = #tpu.core_type<tc>} {
    %c0 = arith.constant 0 : index
    %c0_0 = arith.constant 0 : index
    %0 = vector.load %arg0[%c0, %c0_0] : memref<4x256xf32, #tpu.memory_space<vmem>>, vector<4x256xf32>
    %c0_1 = arith.constant 0 : index
    %c0_2 = arith.constant 0 : index
    %1 = vector.load %arg1[%c0_1, %c0_2] : memref<50x4xf32, #tpu.memory_space<vmem>>, vector<50x4xf32>
    %c0_3 = arith.constant 0 : index
    %c0_4 = arith.constant 0 : index
    %2 = vector.load %arg2[%c0_3, %c0_4] : memref<50x1xf32, #tpu.memory_space<vmem>>, vector<50x1xf32>
    %c0_5 = arith.constant 0 : index
    %c0_6 = arith.constant 0 : index
    %3 = vector.load %arg3[%c0_5, %c0_6] : memref<50x1xf32, #tpu.memory_space<vmem>>, vector<50x1xf32>
    %c0_7 = arith.constant 0 : index
    %c0_8 = arith.constant 0 : index
    %4 = vector.load %arg4[%c0_7, %c0_8] : memref<1x1xf32, #tpu.memory_space<vmem>>, vector<1x1xf32>
    %5 = vector.extract_strided_slice %1 {offsets = [0, 0], sizes = [50, 1], strides = [1, 1]} : vector<50x4xf32> to vector<50x1xf32>
    %6 = vector.extract_strided_slice %0 {offsets = [0, 0], sizes = [1, 256], strides = [1, 1]} : vector<4x256xf32> to vector<1x256xf32>
    %7 = vector.broadcast %5 : vector<50x1xf32> to vector<50x256xf32>
    %8 = vector.broadcast %6 : vector<1x256xf32> to vector<50x256xf32>
    %9 = arith.mulf %7, %8 : vector<50x256xf32>
    %10 = vector.broadcast %2 : vector<50x1xf32> to vector<50x256xf32>
    %11 = arith.addf %10, %9 : vector<50x256xf32>
    %12 = vector.extract_strided_slice %1 {offsets = [0, 1], sizes = [50, 1], strides = [1, 1]} : vector<50x4xf32> to vector<50x1xf32>
    %13 = vector.extract_strided_slice %0 {offsets = [1, 0], sizes = [1, 256], strides = [1, 1]} : vector<4x256xf32> to vector<1x256xf32>
    %14 = vector.broadcast %12 : vector<50x1xf32> to vector<50x256xf32>
    %15 = vector.broadcast %13 : vector<1x256xf32> to vector<50x256xf32>
    %16 = arith.mulf %14, %15 : vector<50x256xf32>
    %17 = arith.addf %11, %16 : vector<50x256xf32>
    %18 = vector.extract_strided_slice %1 {offsets = [0, 2], sizes = [50, 1], strides = [1, 1]} : vector<50x4xf32> to vector<50x1xf32>
    %19 = vector.extract_strided_slice %0 {offsets = [2, 0], sizes = [1, 256], strides = [1, 1]} : vector<4x256xf32> to vector<1x256xf32>
    %20 = vector.broadcast %18 : vector<50x1xf32> to vector<50x256xf32>
    %21 = vector.broadcast %19 : vector<1x256xf32> to vector<50x256xf32>
    %22 = arith.mulf %20, %21 : vector<50x256xf32>
    %23 = arith.addf %17, %22 : vector<50x256xf32>
    %24 = vector.extract_strided_slice %1 {offsets = [0, 3], sizes = [50, 1], strides = [1, 1]} : vector<50x4xf32> to vector<50x1xf32>
    %25 = vector.extract_strided_slice %0 {offsets = [3, 0], sizes = [1, 256], strides = [1, 1]} : vector<4x256xf32> to vector<1x256xf32>
    %26 = vector.broadcast %24 : vector<50x1xf32> to vector<50x256xf32>
    %27 = vector.broadcast %25 : vector<1x256xf32> to vector<50x256xf32>
    %28 = arith.mulf %26, %27 : vector<50x256xf32>
    %29 = arith.addf %23, %28 : vector<50x256xf32>
    %cst = arith.constant 0.000000e+00 : f32
    %30 = vector.broadcast %cst : f32 to vector<50x256xf32>
    %31 = arith.cmpf ogt, %29, %30 : vector<50x256xf32>
    %cst_9 = arith.constant 0.000000e+00 : f32
    %32 = vector.broadcast %cst_9 : f32 to vector<50x256xf32>
    %33 = arith.minimumf %29, %32 : vector<50x256xf32>
    %34 = math.exp %33 : vector<50x256xf32>
    %cst_10 = arith.constant 1.000000e+00 : f32
    %35 = vector.broadcast %cst_10 : f32 to vector<50x256xf32>
    %36 = arith.subf %34, %35 : vector<50x256xf32>
    %37 = arith.select %31, %29, %36 : vector<50x256xi1>, vector<50x256xf32>
    %38 = vector.broadcast %3 : vector<50x1xf32> to vector<50x256xf32>
    %39 = arith.mulf %37, %38 : vector<50x256xf32>
    %cst_11 = arith.constant dense<0.000000e+00> : vector<256xf32>
    %40 = vector.multi_reduction <add>, %39, %cst_11 [0] : vector<50x256xf32> to vector<256xf32>
    %41 = vector.shape_cast %40 : vector<256xf32> to vector<1x256xf32>
    %42 = vector.broadcast %4 : vector<1x1xf32> to vector<1x256xf32>
    %43 = arith.addf %41, %42 : vector<1x256xf32>
    %c0_12 = arith.constant 0 : index
    %c0_13 = arith.constant 0 : index
    %44 = vector.load %arg5[%c0_12, %c0_13] : memref<1x256xf32, #tpu.memory_space<vmem>>, vector<1x256xf32>
    tpu.vector_store %arg5[%c0_12, %c0_13], %43 {strides = array<i32>} : memref<1x256xf32, #tpu.memory_space<vmem>>, vector<1x256xf32>,
    return
  }
}

</mosaic_0001>

<bundles_post_ra>
// kernel: tpu_custom_call.1
= control target key start
LH: loop header
LB: loop body
LE: loop exit
PB: predicated region body
PF: predicated region fallthrough
CT: control target
= control target key end

     0   :  { %s953_s0 = inlined_call_operand.vmem [shape: f32[4,256], index: 0, kind: input, shape index: {}]   ;;  %s954_s1 = inlined_call_operand.vmem [shape: f32[50,4], index: 1, kind: input, shape index: {}]   ;;  %s955_s2 = inlined_call_operand.vmem [shape: f32[50,1], index: 2, kind: input, shape index: {}]   ;;  %s956_s3 = inlined_call_operand.vmem [shape: f32[50,1], index: 3, kind: input, shape index: {}]   ;;  %s957_s4 = inlined_call_operand.<no memory space> [shape: f32[1,1], index: 4, kind: input, shape index: {}]   ;;  %s958_s5 = inlined_call_operand.hbm [shape: f32[1,256], index: 5, kind: output, shape index: {}]  }
   0x1   :  { %v10_v0 = vstv %s957_s4 }
   0x2   :  { %11 = vst [vmem:[#allocation2] sm:$0x1] %v10_v0 }
   0x3   :  { %v661_v1 = vld [vmem:[%s954_s1 + $0x20] sm:$0xff]  ;;  %v26_v2 = vld [vmem:[%s954_s1 + $0x10] sm:$0xff]  ;;  %v620_v4 = vmov 0  }
   0x4   :  { %v24_v3 = vld [vmem:[%s954_s1] sm:$0xff]  ;;  %553 = vset.pattern.permute.xlu2 %v620_v4  ;;  %552 = vset.pattern.permute.xlu1 %v620_v4 }
   0x5   :  { %551 = vset.pattern.permute.xlu0 %v620_v4  ;;  %68 = vperm.xlu2 %553, %v661_v1  }
   0x6   :  { %58 = vperm.xlu1 %552, %v26_v2   ;;  %48 = vperm.xlu0 %551, %v24_v3  }
   0x7   :  { %12 = vsyncpa [#allocation4], 0  ;;  %v29_v5 = vld [vmem:[%s954_s1 + $0x28] sm:$0xff]  ;;  %v27_v6 = vld [vmem:[%s954_s1 + $0x18] sm:$0xff]  ;;  %v621_v16 = vmov 1   ;;  %v622_v17 = vmov 2  }
   0x8   :  { %v25_v7 = vld [vmem:[%s954_s1 + $0x8] sm:$0xff]  ;;  %v31_v9 = vld [vmem:[%s955_s2] sm:$0xff]  ;;  %v30_v10 = vld [vmem:[%s954_s1 + $0x30] sm:$0x3]  ;;  %v623_v18 = vmov 3   ;;  %vm475_vm14 = vcmask 1041408  }
   0x9   :  { %v32_v8 = vld [vmem:[%s955_s2 + $0x8] sm:$0xff]  ;;  %v35_v11 = vld [vmem:[%s955_s2 + $0x20] sm:$0xff]  ;;  %v34_v12 = vld [vmem:[%s955_s2 + $0x18] sm:$0xff]  ;;  %s523_s12 = sshll.u32 %s958_s5, 4  ;;  %vm508_vm15 = vcmask 1040384   ;;  %s524_s12 = int_to_ptr.hbm [resolvable:$true] %s523_s12 }
   0xa   :  { %v33_v13 = vld [vmem:[%s955_s2 + $0x10] sm:$0xff]  ;;  %v36_v15 = vld [vmem:[%s955_s2 + $0x28] sm:$0xff]  ;;  %v38_v23 = vld [vmem:[%s956_s3] sm:$0xff] }
   0xb   :  { %v37_v14 = vld [vmem:[%s955_s2 + $0x30] sm:$0x3]  ;;  %v39_v19 = vld [vmem:[%s956_s3 + $0x8] sm:$0xff]  ;;  %v724_v24 = vld [vmem:[%s953_s0] sm:$0xff] }
   0xc   :  { %v44_v21 = vld [vmem:[%s956_s3 + $0x30] sm:$0x3]  ;;  %v82_v25 = vperm.slane %v724_v24, 0  ;;  %v83_v26 = vperm.slane %v724_v24, 4  ;;  %v41_v31 = vld [vmem:[%s956_s3 + $0x18] sm:$0xff]  ;;  %v42_v35 = vld [vmem:[%s956_s3 + $0x20] sm:$0xff] }
   0xd   :  { %73 = vperm.xlu2 %553, %v29_v5   ;;  %v40_v28 = vld [vmem:[%s956_s3 + $0x10] sm:$0xff]  ;;  %v43_v40 = vld [vmem:[%s956_s3 + $0x28] sm:$0xff]  ;;  %v45_v41 = vld [vmem:[#allocation2] sm:$0x1]  ;;  %v179_v63 = vperm.slane %v724_v24, 1  ;;  %v180_v0 = vperm.slane %v724_v24, 5 }
   0xe   :  { %63 = vperm.xlu1 %552, %v27_v6   ;;  %53 = vperm.xlu0 %551, %v25_v7   ;;  %v734_v29 = vperm.slane %v82_v25, 0  ;;  %v736_v30 = vperm.slane %v83_v26, 0  ;;  %s624_s3 = smov [#allocation3]  }
   0xf   :  { %s521_s9 = sshll.u32 %s624_s3, 4  ;;  %s522_s9 = int_to_ptr.vmem [resolvable:$true] %s521_s9 }
  0x15   :  { %109 = vperm.xlu2 %553, %v32_v8   ;;  %v242_v8 = vperm.slane %v724_v24, 6 }
  0x16   :  { %104 = vperm.xlu1 %552, %v31_v9   ;;  %78 = vperm.xlu0 %551, %v30_v10  }
  0x1d   :  { %124 = vperm.xlu2 %553, %v35_v11  }
  0x1e   :  { %119 = vperm.xlu1 %552, %v34_v12   ;;  %114 = vperm.xlu0 %551, %v33_v13  }
  0x25   :  { %554 = vset.pattern.permute.xlu2 %v621_v16 }
  0x26   :  { %134 = vperm.xlu1 %552, %v37_v14   ;;  %129 = vperm.xlu0 %551, %v36_v15  }
  0x27   :  { %152 = vperm.xlu2 %554, %v24_v3  }
  0x2e   :  { %556 = vset.pattern.permute.xlu1 %v621_v16  ;;  %555 = vset.pattern.permute.xlu0 %v621_v16 }
  0x2f   :  { %160 = vperm.xlu1 %556, %v26_v2   ;;  %164 = vperm.xlu2 %554, %v27_v6  }
  0x30   :  { %156 = vperm.xlu0 %555, %v25_v7  }
  0x37   :  { %168 = vperm.xlu1 %556, %v661_v1   ;;  %172 = vperm.xlu2 %554, %v29_v5  }
  0x38   :  { %176 = vperm.xlu0 %555, %v30_v10  }
  0x3f   :  { %557 = vset.pattern.permute.xlu1 %v622_v17  ;;  %558 = vset.pattern.permute.xlu2 %v622_v17 }
  0x40   :  { %559 = vset.pattern.permute.xlu0 %v622_v17  ;;  %214 = vperm.xlu1 %557, %v24_v3   ;;  %v303_v17 = vperm.slane %v724_v24, 3 }
  0x41   :  { %218 = vperm.xlu2 %558, %v25_v7   ;;  %222 = vperm.xlu0 %559, %v26_v2  }
  0x48   :  { %226 = vperm.xlu1 %557, %v27_v6  }
  0x49   :  { %230 = vperm.xlu2 %558, %v661_v1   ;;  %560 = vset.pattern.permute.xlu0 %v623_v18 }
  0x4a   :  { %276 = vperm.xlu0 %560, %v24_v3  }
  0x50   :  { %234 = vperm.xlu1 %557, %v29_v5  }
  0x51   :  { %238 = vperm.xlu2 %558, %v30_v10  }
  0x52   :  { %296 = vperm.xlu0 %560, %v29_v5  }
  0x58   :  { %561 = vset.pattern.permute.xlu1 %v623_v18 }
  0x59   :  { %562 = vset.pattern.permute.xlu2 %v623_v18  ;;  %280 = vperm.xlu1 %561, %v25_v7   ;;  %v782_v7 = vperm.slane %v180_v0, 1  ;;  %v304_v18 = vperm.slane %v724_v24, 7 }
  0x5a   :  { %284 = vperm.xlu2 %562, %v26_v2   ;;  %564 = vset.pattern.permute.xlu0 %v620_v4 }
  0x5b   :  { %428 = vperm.xlu0 %564, %v39_v19  }
  0x5f   :  { %v69_v20 = vpop.permute.xlu2 %68 }
  0x60   :  { %v96_v32 = vmul.f32 %v734_v29, %v69_v20  ;;  %v97_v33 = vmul.f32 %v736_v30, %v69_v20 }
  0x61   :  { %288 = vperm.xlu1 %561, %v27_v6   ;;  %v780_v6 = vperm.slane %v179_v63, 1 }
  0x62   :  { %292 = vperm.xlu2 %562, %v661_v1  }
  0x63   :  { %453 = vperm.xlu0 %564, %v44_v21  }
  0x67   :  { %v716_v22 = vpop.permute.xlu2 %73 }
  0x68   :  { %v98_v12 = vmul.f32 %v734_v29, %v716_v22  ;;  %v99_v13 = vmul.f32 %v736_v30, %v716_v22 }
  0x69   :  { %300 = vperm.xlu1 %561, %v30_v10  }
  0x6a   :  { %563 = vset.pattern.permute.xlu2 %v620_v4 }
  0x6b   :  { %423 = vperm.xlu2 %563, %v38_v23   ;;  %v800_v23 = vperm.slane %v242_v8, 2 }
  0x6f   :  { %v729_v27 = vpop.permute.xlu2 %109 }
  0x71   :  { %565 = vset.pattern.permute.xlu1 %v620_v4  ;;  %v241_v4 = vperm.slane %v724_v24, 2 }
  0x72   :  { %433 = vperm.xlu1 %565, %v40_v28  }
  0x73   :  { %438 = vperm.xlu2 %563, %v41_v31   ;;  %v794_v16 = vperm.slane %v241_v4, 2 }
  0x77   :  { %v125_v34 = vpop.permute.xlu2 %124 }
  0x78   :  { %v59_v36 = vpop.permute.xlu1 %58  ;;  %v49_v37 = vpop.permute.xlu0 %48  ;;  %v747_v38 = vadd.f32 %v125_v34, %v96_v32  ;;  %v749_v39 = vadd.f32 %v125_v34, %v97_v33 }
  0x79   :  { %v88_v5 = vmul.f32 %v734_v29, %v49_v37  ;;  %v89_v9 = vmul.f32 %v736_v30, %v49_v37  ;;  %v92_v14 = vmul.f32 %v734_v29, %v59_v36  ;;  %v93_v15 = vmul.f32 %v736_v30, %v59_v36 }
  0x7a   :  { %443 = vperm.xlu1 %565, %v42_v35  }
  0x7b   :  { %448 = vperm.xlu2 %563, %v43_v40   ;;  %v812_v40 = vperm.slane %v303_v17, 3 }
  0x80   :  { %v64_v42 = vpop.permute.xlu1 %63  ;;  %v54_v43 = vpop.permute.xlu0 %53 }
  0x81   :  { %v153_v44 = vpop.permute.xlu2 %152  ;;  %v94_v48 = vmul.f32 %v734_v29, %v64_v42  ;;  %v95_v49 = vmul.f32 %v736_v30, %v64_v42  ;;  %v90_v10 = vmul.f32 %v734_v29, %v54_v43  ;;  %v91_v11 = vmul.f32 %v736_v30, %v54_v43 }
  0x82   :  { %499 = vperm.xlu1 %565, %v45_v41   ;;  %v185_v19 = vmul.f32 %v780_v6, %v153_v44  ;;  %v186_v20 = vmul.f32 %v782_v7, %v153_v44 }
  0x83   :  { %v139_v25 = vadd.f32 %v729_v27, %v90_v10  ;;  %v140_v22 = vadd.f32 %v729_v27, %v91_v11  ;;  %v814_v27 = vperm.slane %v304_v18, 3 }
  0x88   :  { %v105_v45 = vpop.permute.xlu1 %104  ;;  %v79_v46 = vpop.permute.xlu0 %78 }
  0x89   :  { %v165_v47 = vpop.permute.xlu2 %164  ;;  %v137_v21 = vadd.f32 %v105_v45, %v88_v5  ;;  %v138_v26 = vadd.f32 %v105_v45, %v89_v9  ;;  %v100_v32 = vmul.f32 %v734_v29, %v79_v46  ;;  %v101_v24 = vmul.f32 %v736_v30, %v79_v46 }
  0x8a   :  { %v191_v43 = vmul.f32 %v780_v6, %v165_v47  ;;  %v192_v29 = vmul.f32 %v782_v7, %v165_v47 }
  0x8b   :  { %v199_v42 = vadd.f32 %v185_v19, %v137_v21  ;;  %v200_v44 = vadd.f32 %v186_v20, %v138_v26 }
  0x90   :  { %v120_v50 = vpop.permute.xlu1 %119  ;;  %v115_v51 = vpop.permute.xlu0 %114 }
  0x91   :  { %v756_v52 = vadd.f32 %v120_v50, %v94_v48  ;;  %v758_v53 = vadd.f32 %v120_v50, %v95_v49  ;;  %v173_v54 = vpop.permute.xlu2 %172  ;;  %v141_v33 = vadd.f32 %v115_v51, %v92_v14  ;;  %v142_v49 = vadd.f32 %v115_v51, %v93_v15 }
  0x92   :  { %v195_v50 = vmul.f32 %v780_v6, %v173_v54 }
  0x93   :  { %v833_v51 = vadd.f32 %v192_v29, %v758_v53 }
  0x98   :  { %v760_v55 = vpop.permute.xlu1 %134  ;;  %v762_v56 = vpop.permute.xlu0 %129 }
  0x99   :  { %v150_v53 = vadd.f32 %v760_v55, %v101_v24  ;;  %v147_v19 = vadd.f32 %v762_v56, %v98_v12 }
  0x9b   :  { %v764_v57 = vpop.permute.xlu2 %218 }
  0x9c   :  { %v249_v21 = vmul.f32 %v794_v16, %v764_v57  ;;  %v250_v26 = vmul.f32 %v800_v23, %v764_v57 }
  0xa1   :  { %v161_v58 = vpop.permute.xlu1 %160 }
  0xa2   :  { %v766_v59 = vpop.permute.xlu0 %156  ;;  %v189_v28 = vmul.f32 %v780_v6, %v161_v58  ;;  %v190_v30 = vmul.f32 %v782_v7, %v161_v58  ;;  %v826_v58 = vadd.f32 %v191_v43, %v756_v52  ;;  %v149_v52 = vadd.f32 %v760_v55, %v100_v32 }
  0xa3   :  { %v768_v60 = vpop.permute.xlu2 %230  ;;  %v187_v9 = vmul.f32 %v780_v6, %v766_v59 }
  0xa4   :  { %v203_v45 = vadd.f32 %v189_v28, %v141_v33  ;;  %v204_v8 = vadd.f32 %v190_v30, %v142_v49  ;;  %v255_v55 = vmul.f32 %v794_v16, %v768_v60 }
  0xa5   :  { %v201_v28 = vadd.f32 %v187_v9, %v139_v25  ;;  %v209_v25 = vadd.f32 %v195_v50, %v147_v19 }
  0xa7   :  { %v263_v43 = vadd.f32 %v249_v21, %v201_v28 }
  0xa9   :  { %v770_v61 = vpop.permute.xlu1 %168 }
  0xaa   :  { %v772_v62 = vpop.permute.xlu0 %176  ;;  %v194_v15 = vmul.f32 %v782_v7, %v770_v61 }
  0xab   :  { %v776_v1 = vpop.permute.xlu2 %238 }
  0xac   :  { %v208_v24 = vadd.f32 %v194_v15, %v749_v39  ;;  %v197_v39 = vmul.f32 %v780_v6, %v772_v62  ;;  %v259_v19 = vmul.f32 %v794_v16, %v776_v1 }
  0xb2   :  { %v215_v2 = vpop.permute.xlu1 %214 }
  0xb3   :  { %v223_v3 = vpop.permute.xlu0 %222  ;;  %v247_v34 = vmul.f32 %v794_v16, %v215_v2  ;;  %v248_v36 = vmul.f32 %v800_v23, %v215_v2  ;;  %v196_v2 = vmul.f32 %v782_v7, %v173_v54  ;;  %v193_v54 = vmul.f32 %v780_v6, %v770_v61 }
  0xb4   :  { %v285_v35 = vpop.permute.xlu2 %284  ;;  %v251_v37 = vmul.f32 %v794_v16, %v223_v3  ;;  %v252_v0 = vmul.f32 %v800_v23, %v223_v3  ;;  %v188_v3 = vmul.f32 %v782_v7, %v766_v59  ;;  %v148_v59 = vadd.f32 %v762_v56, %v99_v13 }
  0xb5   :  { %v261_v63 = vadd.f32 %v247_v34, %v199_v42  ;;  %v262_v4 = vadd.f32 %v248_v36, %v200_v44  ;;  %v313_v47 = vmul.f32 %v812_v40, %v285_v35  ;;  %v314_v18 = vmul.f32 %v814_v27, %v285_v35 }
  0xb6   :  { %v265_v5 = vadd.f32 %v251_v37, %v203_v45  ;;  %v266_v17 = vadd.f32 %v252_v0, %v204_v8  ;;  %v202_v33 = vadd.f32 %v188_v3, %v140_v22  ;;  %v207_v12 = vadd.f32 %v193_v54, %v747_v38 }
  0xb7   :  { %v256_v13 = vmul.f32 %v800_v23, %v768_v60  ;;  %v210_v35 = vadd.f32 %v196_v2, %v148_v59  ;;  %v198_v6 = vmul.f32 %v782_v7, %v772_v62  ;;  %v260_v59 = vmul.f32 %v800_v23, %v776_v1 }
  0xb8   :  { %v848_v20 = vadd.f32 %v313_v47, %v265_v5  ;;  %v862_v34 = vadd.f32 %v314_v18, %v266_v17  ;;  %v269_v60 = vadd.f32 %v255_v55, %v207_v12  ;;  %v264_v30 = vadd.f32 %v250_v26, %v202_v33 }
  0xb9   :  { %v270_v45 = vadd.f32 %v256_v13, %v208_v24  ;;  %v211_v18 = vadd.f32 %v197_v39, %v149_v52  ;;  %v212_v26 = vadd.f32 %v198_v6, %v150_v53 }
  0xba   :  { %v805_v31 = vpop.permute.xlu1 %226  ;;  %v355_v22 = vmin.f32 %v848_v20, 0.0  ;;  %v356_v44 = vmin.f32 %v862_v34, 0.0  ;;  %vm341_vm4 = vcmp.gt.f32.partialorder %v848_v20, 0.0  ;;  %vm342_vm5 = vcmp.gt.f32.partialorder %v862_v34, 0.0 }
  0xbb   :  { %v253_v54 = vmul.f32 %v794_v16, %v805_v31 }
  0xbc   :  { %v277_v41 = vpop.permute.xlu0 %276  ;;  %v293_v32 = vpop.permute.xlu2 %292  ;;  %v373_v50 = vmul.f32 1.442695, %v355_v22  ;;  %v375_v3 = vmul.f32 1.442695, %v356_v44 }
  0xbd   :  { %v309_v46 = vmul.f32 %v812_v40, %v277_v41  ;;  %v310_v48 = vmul.f32 %v814_v27, %v277_v41  ;;  %v317_v36 = vmul.f32 %v812_v40, %v293_v32  ;;  %v318_v38 = vmul.f32 %v814_v27, %v293_v32 }
  0xbe   :  { %v267_v33 = vadd.f32 %v253_v54, %v826_v58 }
  0xbf   :  { %v830_v10 = vadd.f32 %v309_v46, %v261_v63  ;;  %v839_v11 = vadd.f32 %v310_v48, %v262_v4  ;;  %v873_v63 = vadd.f32 %v317_v36, %v269_v60  ;;  %v879_v4 = vadd.f32 %v318_v38, %v270_v45 }
  0xc1   :  { %v351_v61 = vmin.f32 %v830_v10, 0.0  ;;  %v352_v56 = vmin.f32 %v839_v11, 0.0  ;;  %v359_v62 = vmin.f32 %v873_v63, 0.0  ;;  %v360_v21 = vmin.f32 %v879_v4, 0.0 }
  0xc2   :  { %v235_v14 = vpop.permute.xlu1 %234  ;;  %vm337_vm0 = vcmp.gt.f32.partialorder %v830_v10, 0.0  ;;  %vm338_vm1 = vcmp.gt.f32.partialorder %v839_v11, 0.0  ;;  %vm345_vm9 = vcmp.gt.f32.partialorder %v873_v63, 0.0  ;;  %vm346_vm10 = vcmp.gt.f32.partialorder %v879_v4, 0.0 }
  0xc3   :  { %v257_v57 = vmul.f32 %v794_v16, %v235_v14  ;;  %v365_v41 = vmul.f32 1.442695, %v351_v61  ;;  %v258_v42 = vmul.f32 %v800_v23, %v235_v14  ;;  %v367_v29 = vmul.f32 1.442695, %v352_v56 }
  0xc4   :  { %v297_v37 = vpop.permute.xlu0 %296  ;;  %v254_v14 = vmul.f32 %v800_v23, %v805_v31  ;;  %v381_v56 = vmul.f32 1.442695, %v359_v62  ;;  %v383_v53 = vmul.f32 1.442695, %v360_v21 }
  0xc5   :  { %v271_v46 = vadd.f32 %v257_v57, %v209_v25  ;;  %v319_v48 = vmul.f32 %v812_v40, %v297_v37  ;;  %v272_v5 = vadd.f32 %v258_v42, %v210_v35  ;;  %566 = vpow2.f32 %v365_v41  ;;  %v424_v35 = vpop.permute.xlu2 %423 }
  0xc6   :  { %v320_v47 = vmul.f32 %v814_v27, %v297_v37  ;;  %568 = vpow2.f32 %v367_v29  ;;  %v268_v55 = vadd.f32 %v254_v14, %v833_v51  ;;  %v273_v25 = vadd.f32 %v259_v19, %v211_v18 }
  0xc7   :  { %v890_v15 = vadd.f32 %v319_v48, %v271_v46  ;;  %570 = vpow2.f32 %v373_v50  ;;  %v274_v37 = vadd.f32 %v260_v59, %v212_v26 }
  0xc8   :  { %v900_v31 = vadd.f32 %v320_v47, %v272_v5  ;;  %572 = vpow2.f32 %v375_v3 }
  0xc9   :  { %v361_v52 = vmin.f32 %v890_v15, 0.0  ;;  %vm347_vm8 = vcmp.gt.f32.partialorder %v890_v15, 0.0 }
  0xca   :  { %v362_v24 = vmin.f32 %v900_v31, 0.0  ;;  %vm348_vm11 = vcmp.gt.f32.partialorder %v900_v31, 0.0 }
  0xcb   :  { %v281_v49 = vpop.permute.xlu1 %280  ;;  %v567_v61 = vpop.eup %566  ;;  %v385_v36 = vmul.f32 1.442695, %v361_v52 }
  0xcc   :  { %v311_v0 = vmul.f32 %v812_v40, %v281_v49  ;;  %v312_v2 = vmul.f32 %v814_v27, %v281_v49  ;;  %v569_v16 = vpop.eup %568  ;;  %v532_v57 = vadd.f32 -1.0, %v567_v61  ;;  %v387_v44 = vmul.f32 1.442695, %v362_v24 }
  0xcd   :  { %v571_v13 = vpop.eup %570  ;;  %v533_v22 = vadd.f32 -1.0, %v569_v16  ;;  %v429_v49 = vpop.permute.xlu0 %428 }
  0xce   :  { %v882_v8 = vadd.f32 %v311_v0, %v263_v43  ;;  %v884_v9 = vadd.f32 %v312_v2, %v264_v30  ;;  %v573_v42 = vpop.eup %572  ;;  %v536_v43 = vadd.f32 -1.0, %v571_v13  ;;  %v407_v60 = vsel %vm337_vm0, %v830_v10, %v532_v57 }
  0xcf   :  { %v408_v46 = vsel %vm338_vm1, %v839_v11, %v533_v22  ;;  %v456_v5 = vmul.f32 %v424_v35, %v407_v60 }
  0xd0   :  { %v353_v7 = vmin.f32 %v882_v8, 0.0  ;;  %v354_v17 = vmin.f32 %v884_v9, 0.0  ;;  %vm339_vm2 = vcmp.gt.f32.partialorder %v882_v8, 0.0  ;;  %vm340_vm3 = vcmp.gt.f32.partialorder %v884_v9, 0.0 }
  0xd2   :  { %v369_v28 = vmul.f32 1.442695, %v353_v7  ;;  %v371_v32 = vmul.f32 1.442695, %v354_v17  ;;  %v457_v7 = vmul.f32 %v424_v35, %v408_v46 }
  0xd3   :  { %v289_v12 = vpop.permute.xlu1 %288 }
  0xd4   :  { %v315_v1 = vmul.f32 %v812_v40, %v289_v12  ;;  %v316_v23 = vmul.f32 %v814_v27, %v289_v12  ;;  %574 = vpow2.f32 %v369_v28 }
  0xd5   :  { %576 = vpow2.f32 %v371_v32 }
  0xd6   :  { %v908_v58 = vadd.f32 %v315_v1, %v267_v33  ;;  %v910_v51 = vadd.f32 %v316_v23, %v268_v55  ;;  %578 = vpow2.f32 %v381_v56  ;;  %v411_v33 = vsel %vm341_vm4, %v848_v20, %v536_v43 }
  0xd7   :  { %580 = vpow2.f32 %v383_v53 }
  0xd8   :  { %v357_v38 = vmin.f32 %v908_v58, 0.0  ;;  %v358_v41 = vmin.f32 %v910_v51, 0.0  ;;  %582 = vpow2.f32 %v385_v36  ;;  %vm343_vm6 = vcmp.gt.f32.partialorder %v908_v58, 0.0 }
  0xd9   :  { %vm344_vm7 = vcmp.gt.f32.partialorder %v910_v51, 0.0 }
  0xda   :  { %v575_v39 = vpop.eup %574  ;;  %v377_v29 = vmul.f32 1.442695, %v357_v38  ;;  %v379_v30 = vmul.f32 1.442695, %v358_v41 }
  0xdb   :  { %v577_v45 = vpop.eup %576  ;;  %v301_v48 = vpop.permute.xlu1 %300  ;;  %v534_v50 = vadd.f32 -1.0, %v575_v39 }
  0xdc   :  { %584 = vpow2.f32 %v377_v29  ;;  %v321_v0 = vmul.f32 %v812_v40, %v301_v48  ;;  %v322_v2 = vmul.f32 %v814_v27, %v301_v48  ;;  %v535_v6 = vadd.f32 -1.0, %v577_v45  ;;  %v579_v47 = vpop.eup %578 }
  0xdd   :  { %586 = vpow2.f32 %v379_v30  ;;  %v409_v10 = vsel %vm339_vm2, %v882_v8, %v534_v50  ;;  %v581_v62 = vpop.eup %580  ;;  %v537_v27 = vadd.f32 -1.0, %v573_v42  ;;  %v439_v8 = vpop.permute.xlu2 %438  ;;  %v540_v13 = vadd.f32 -1.0, %v579_v47 }
  0xde   :  { %v923_v11 = vadd.f32 %v321_v0, %v273_v25  ;;  %v925_v3 = vadd.f32 %v322_v2, %v274_v37  ;;  %v410_v54 = vsel %vm340_vm3, %v884_v9, %v535_v6  ;;  %v458_v14 = vmul.f32 %v429_v49, %v409_v10  ;;  %v583_v59 = vpop.eup %582 }
  0xdf   :  { %588 = vpow2.f32 %v387_v44  ;;  %v459_v40 = vmul.f32 %v429_v49, %v410_v54  ;;  %v412_v55 = vsel %vm342_vm5, %v862_v34, %v537_v27  ;;  %v542_v20 = vadd.f32 -1.0, %v583_v59  ;;  %v454_v44 = vpop.permute.xlu0 %453 }
  0xe0   :  { %v363_v17 = vmin.f32 %v923_v11, 0.0  ;;  %v364_v18 = vmin.f32 %v925_v3, 0.0  ;;  %v470_v19 = vadd.f32 %v458_v14, %v456_v5  ;;  %v541_v22 = vadd.f32 -1.0, %v581_v62 }
  0xe1   :  { %v484_v21 = vadd.f32 %v459_v40, %v457_v7  ;;  %v415_v43 = vsel %vm345_vm9, %v873_v63, %v540_v13  ;;  %vm349_vm12 = vcmp.gt.f32.partialorder %v923_v11, 0.0  ;;  %vm350_vm13 = vcmp.gt.f32.partialorder %v925_v3, 0.0 }
  0xe2   :  { %v585_v26 = vpop.eup %584  ;;  %v389_v9 = vmul.f32 1.442695, %v363_v17  ;;  %v391_v28 = vmul.f32 1.442695, %v364_v18  ;;  %v416_v30 = vsel %vm346_vm10, %v879_v4, %v541_v22 }
  0xe3   :  { %v587_v32 = vpop.eup %586  ;;  %v538_v61 = vadd.f32 -1.0, %v585_v26 }
  0xe4   :  { %v539_v52 = vadd.f32 -1.0, %v587_v32  ;;  %v434_v12 = vpop.permute.xlu1 %433  ;;  %590 = vpow2.f32 %v389_v9  ;;  %v511_v9 = vlaneseq }
  0xe5   :  { %v589_v16 = vpop.eup %588  ;;  %v413_v56 = vsel %vm343_vm6, %v908_v58, %v538_v61  ;;  %v460_v1 = vmul.f32 %v434_v12, %v411_v33  ;;  %v461_v23 = vmul.f32 %v434_v12, %v412_v55  ;;  %592 = vpow2.f32 %v391_v28  ;;  %v449_v41 = vpop.permute.xlu2 %448 }
  0xe6   :  { %v414_v53 = vsel %vm344_vm7, %v910_v51, %v539_v52  ;;  %v462_v24 = vmul.f32 %v439_v8, %v413_v56  ;;  %v543_v35 = vadd.f32 -1.0, %v589_v16  ;;  %v417_v51 = vsel %vm347_vm8, %v890_v15, %v542_v20 }
  0xe7   :  { %v471_v57 = vadd.f32 %v470_v19, %v460_v1  ;;  %v485_v34 = vadd.f32 %v484_v21, %v461_v23  ;;  %v463_v25 = vmul.f32 %v439_v8, %v414_v53  ;;  %v466_v49 = vmul.f32 %v449_v41, %v417_v51 }
  0xe8   :  { %v418_v39 = vsel %vm348_vm11, %v900_v31, %v543_v35  ;;  %vm513_vm0 = vcmp.lt.s32.totalorder %v511_v9, 256 }
  0xe9   :  { %v472_v36 = vadd.f32 %v471_v57, %v462_v24  ;;  %v486_v37 = vadd.f32 %v485_v34, %v463_v25  ;;  %v467_v50 = vmul.f32 %v449_v41, %v418_v39 }
  0xea   :  { %v591_v38 = vpop.eup %590 }
  0xeb   :  { %v593_v58 = vpop.eup %592  ;;  %v544_v42 = vadd.f32 -1.0, %v591_v38 }
  0xec   :  { %v545_v60 = vadd.f32 -1.0, %v593_v58  ;;  %v444_v29 = vpop.permute.xlu1 %443 }
  0xed   :  { %v419_v45 = vsel %vm349_vm12, %v923_v11, %v544_v42  ;;  %v464_v46 = vmul.f32 %v444_v29, %v415_v43  ;;  %v465_v48 = vmul.f32 %v444_v29, %v416_v30 }
  0xee   :  { %v420_v15 = vsel %vm350_vm13, %v925_v3, %v545_v60  ;;  %v468_v63 = vmul.f32 %v454_v44, %v419_v45 }
  0xef   :  { %v469_v31 = vmul.f32 %v454_v44, %v420_v15  ;;  %v473_v0 = vadd.f32 %v472_v36, %v464_v46  ;;  %v487_v2 = vadd.f32 %v486_v37, %v465_v48 }
  0xf0   :  { %v476_v10 = vsel %vm475_vm14, %v468_v63, 0.0 }
  0xf1   :  { %v474_v6 = vadd.f32 %v473_v0, %v466_v49  ;;  %v488_v5 = vadd.f32 %v487_v2, %v467_v50  ;;  %v489_v4 = vsel %vm475_vm14, %v469_v31, 0.0 }
  0xf3   :  { %v477_v47 = vadd.f32 %v476_v10, %v474_v6  ;;  %v490_v54 = vadd.f32 %v489_v4, %v488_v5 }
  0xf4   :  { %v500_v3 = vpop.permute.xlu1 %499 }
  0xf5   :  { %v478_v14 = vrot.slane %v477_v47, 4  ;;  %v491_v62 = vrot.slane %v490_v54, 4  ;;  %v502_v26 = vperm.slane %v500_v3, 0 }
  0xf7   :  { %v479_v11 = vadd.f32 %v478_v14, %v477_v47  ;;  %v492_v7 = vadd.f32 %v491_v62, %v490_v54 }
  0xf9   :  { %v480_v40 = vrot.slane %v479_v11, 2  ;;  %v493_v27 = vrot.slane %v492_v7, 2 }
  0xfb   :  { %v481_v17 = vadd.f32 %v480_v40, %v479_v11  ;;  %v494_v18 = vadd.f32 %v493_v27, %v492_v7 }
  0xfd   :  { %v482_v19 = vrot.slane %v481_v17, 1  ;;  %v495_v59 = vrot.slane %v494_v18, 1 }
  0xff   :  { %v483_v8 = vadd.f32 %v482_v19, %v481_v17  ;;  %v496_v21 = vadd.f32 %v495_v59, %v494_v18 }
 0x101   :  { %v504_v28 = vadd.f32 %v502_v26, %v496_v21  ;;  %v503_v32 = vadd.f32 %v502_v26, %v483_v8 }
 0x103   :  { %v507_v61 = vrot.slane %v504_v28, 7 }
 0x105   :  { %v509_v33 = vsel %vm508_vm15, %v503_v32, %v507_v61 }
 0x106   :  { %515 = vst.msk [vmem:[#allocation3] sm:$0x3] %vm513_vm0, %v509_v33 }
 0x107   :  { %526 = dma.vmem_to_hbm [thread:$0]  %s522_s9, 32, %s524_s12, [#allocation4]  }
 0x108   :  { %618 = dma.done.wait [#allocation4], 32  }
 0x109   :  { %619 = vsyncadd [#allocation4], 4294967264 }
 0x10a   :  { %531 = vsyncpa [#allocation4], 1 }

</bundles_post_ra>
